<compile_context>
chip_gen: v7x
topology: tpu7x:2x2x1
jax: 0.10.0
libtpu: 0.0.40
codegen_flags: <defaults>
</compile_context>

<pallas_src>
import jax
import jax.numpy as jnp
from jax.experimental import pallas as pl
from jax.experimental.pallas import tpu as pltpu


def _round_up(x, m):
    return (x + m - 1) // m * m


def map_classifier_kernel(y_ref, b_ref, x_ref, w_ref, o_ref, acc_ref):
    # y_ref : SMEM (1,)   f32 label (0.0 or 1.0)
    # b_ref : SMEM (1, 1) f32 classifier bias
    # x_ref : VMEM (TB, TD) bf16 input tile
    # w_ref : VMEM (TD, 1)  bf16 weight tile
    # o_ref : VMEM (TB, 1)  f32 output block (same block across the D axis)
    # acc_ref: VMEM (TB, 1) f32 accumulator scratch
    k = pl.program_id(1)

    @pl.when(k == 0)
    def _():
        acc_ref[...] = jnp.zeros_like(acc_ref)

    # Partial dot-product on the MXU, accumulated in f32.
    acc_ref[...] += jnp.dot(
        x_ref[...], w_ref[...], preferred_element_type=jnp.float32
    )

    @pl.when(k == pl.num_programs(1) - 1)
    def _():
        sign = 2.0 * y_ref[0] - 1.0            # y*l - (1-y)*l == (2y-1)*l
        o_ref[...] = sign * (acc_ref[...] + b_ref[0, 0])


def map_wrapper_forward(x_nchw, w, b, y, *, tb=256, td=2048,
                        stream_dtype=jnp.bfloat16):
    """x_nchw: [B,C,H,W]; w: [1, C*H*W] (or [D]); b: [1,1]; y: [1] in {0,1}."""
    B = int(x_nchw.shape[0])
    D = 1
    for s in x_nchw.shape[1:]:
        D *= int(s)

    x_flat = x_nchw.reshape(B, D).astype(stream_dtype)
    w_col = jnp.reshape(w, (D, 1)).astype(stream_dtype)
    b_sc = jnp.reshape(b, (1, 1)).astype(jnp.float32)
    y_sc = jnp.reshape(y, (1,)).astype(jnp.float32)

    # Tile sizes: sublanes in multiples of 16 (bf16 packing), lanes in 128s.
    # Defaults (TB=256, TD=2048) keep the x buffer at ~1 MiB -> safe on v7x's
    # 64 MiB VMEM while still big enough to amortize per-step overhead; on
    # v6e/v5e td can be raised to 4096-8192.
    TB = min(tb, _round_up(B, 16))
    TD = min(td, _round_up(D, 128))
    B_pad = _round_up(B, TB)
    D_pad = _round_up(D, TD)

    # Zero-pad: zeros contribute nothing to the reduction; padded batch rows
    # are sliced off below.
    if B_pad != B or D_pad != D:
        x_flat = jnp.pad(x_flat, ((0, B_pad - B), (0, D_pad - D)))
    if D_pad != D:
        w_col = jnp.pad(w_col, ((0, D_pad - D), (0, 0)))

    grid = (B_pad // TB, D_pad // TD)

    itm = jnp.dtype(stream_dtype).itemsize
    cost = pl.CostEstimate(
        flops=2 * B_pad * D_pad,
        transcendentals=0,
        bytes_accessed=B_pad * D_pad * itm + D_pad * itm + B_pad * 4,
    )

    grid_spec = pltpu.PrefetchScalarGridSpec(
        num_scalar_prefetch=0,
        grid=grid,
        in_specs=[
            pl.BlockSpec(memory_space=pltpu.MemorySpace.SMEM),   # y (label)
            pl.BlockSpec(memory_space=pltpu.MemorySpace.SMEM),   # bias
            pl.BlockSpec((TB, TD), lambda i, k: (i, k)),         # x tile
            pl.BlockSpec((TD, 1), lambda i, k: (k, 0)),          # w tile
        ],
        out_specs=pl.BlockSpec((TB, 1), lambda i, k: (i, 0)),
        scratch_shapes=[pltpu.VMEM((TB, 1), jnp.float32)],
    )

    out = pl.pallas_call(
        map_classifier_kernel,
        out_shape=jax.ShapeDtypeStruct((B_pad, 1), jnp.float32),
        grid_spec=grid_spec,
        compiler_params=pltpu.CompilerParams(
            dimension_semantics=("parallel", "arbitrary"),
            vmem_limit_bytes=64 * 1024 * 1024,
        ),
        cost_estimate=cost,
    )(y_sc, b_sc, x_flat, w_col)

    # Output already carries the trailing singleton dim == logits.unsqueeze(1).
    return out[:B]


if __name__ == "__main__":
    key = jax.random.PRNGKey(0)
    kx, kw, kb = jax.random.split(key, 3)

    B, C, H, W = 2, 4, 16, 16
    D = C * H * W

    x = jax.random.normal(kx, (B, C, H, W), dtype=jnp.float32)
    w = jax.random.normal(kw, (1, D), dtype=jnp.float32) * 0.02
    b = jax.random.normal(kb, (1, 1), dtype=jnp.float32) * 0.02
    y1 = jnp.array([1.0], dtype=jnp.float32)
    y0 = jnp.array([0.0], dtype=jnp.float32)

    out1 = jax.block_until_ready(map_wrapper_forward(x, w, b, y1))
    out0 = jax.block_until_ready(map_wrapper_forward(x, w, b, y0))

    # Pure-JAX reference with the same bf16 streaming / f32 accumulation.
    x_r = x.reshape(B, D).astype(jnp.bfloat16).astype(jnp.float32)
    w_r = w.reshape(D).astype(jnp.bfloat16).astype(jnp.float32)
    logits = x_r @ w_r + b[0, 0]
    ref1 = ((2.0 * y1[0] - 1.0) * logits)[:, None]
    ref0 = ((2.0 * y0[0] - 1.0) * logits)[:, None]

    assert out1.shape == (B, 1) and out0.shape == (B, 1)
    assert jnp.allclose(out1, ref1, atol=2e-3, rtol=2e-3)
    assert jnp.allclose(out0, ref0, atol=2e-3, rtol=2e-3)

    print("KERNEL_OK")
</pallas_src>

<mosaic_0001>
module attributes {stable_mosaic.version = 11 : i64} {
  func.func @map_classifier_kernel(%arg0: i32, %arg1: i32, %arg2: memref<1xf32, #tpu.memory_space<smem>>, %arg3: memref<1x1xf32, #tpu.memory_space<smem>>, %arg4: memref<16x1024xbf16, #tpu.memory_space<vmem>>, %arg5: memref<1024x1xbf16, #tpu.memory_space<vmem>>, %arg6: memref<16x1xf32, #tpu.memory_space<vmem>>, %arg7: memref<16x1xf32, #tpu.memory_space<vmem>>) attributes {dimension_semantics = [#tpu.dimension_semantics<parallel>, #tpu.dimension_semantics<arbitrary>], iteration_bounds = array<i64: 1, 1>, scalar_prefetch = 0 : i64, scratch_operands = 1 : i64, tpu.core_type = #tpu.core_type<tc>, window_params = [{transform_indices = @transform_0, window_bounds = array<i64: 1>}, {transform_indices = @transform_1, window_bounds = array<i64: 1, 1>}, {transform_indices = @transform_2, window_bounds = array<i64: 16, 1024>}, {transform_indices = @transform_3, window_bounds = array<i64: 1024, 1>}, {transform_indices = @transform_4, window_bounds = array<i64: 16, 1>}]} {
    %c0_i32 = arith.constant 0 : i32
    %0 = arith.cmpi eq, %arg1, %c0_i32 : i32
    %1 = arith.extui %0 : i1 to i32
    %c0_i32_0 = arith.constant 0 : i32
    %2 = arith.cmpi ne, %1, %c0_i32_0 : i32
    scf.if %2 {
      %cst_10 = arith.constant 0.000000e+00 : f32
      %12 = vector.broadcast %cst_10 : f32 to vector<16x1xf32>
      %c0_11 = arith.constant 0 : index
      %c0_12 = arith.constant 0 : index
      %13 = vector.load %arg7[%c0_11, %c0_12] : memref<16x1xf32, #tpu.memory_space<vmem>>, vector<16x1xf32>
      tpu.vector_store %arg7[%c0_11, %c0_12], %12 {strides = array<i32>} : memref<16x1xf32, #tpu.memory_space<vmem>>, vector<16x1xf32>,
    } else {
    }
    %c0 = arith.constant 0 : index
    %c0_1 = arith.constant 0 : index
    %3 = vector.load %arg7[%c0, %c0_1] : memref<16x1xf32, #tpu.memory_space<vmem>>, vector<16x1xf32>
    %c0_2 = arith.constant 0 : index
    %c0_3 = arith.constant 0 : index
    %4 = vector.load %arg4[%c0_2, %c0_3] : memref<16x1024xbf16, #tpu.memory_space<vmem>>, vector<16x1024xbf16>
    %c0_4 = arith.constant 0 : index
    %c0_5 = arith.constant 0 : index
    %5 = vector.load %arg5[%c0_4, %c0_5] : memref<1024x1xbf16, #tpu.memory_space<vmem>>, vector<1024x1xbf16>
    %cst = arith.constant dense<0.000000e+00> : vector<16x1xf32>
    %6 = tpu.matmul %4, %5, %cst {dimension_numbers = #tpu.dot_dimension_numbers<[1], [0], [0], [1], [0, 0, 1, 1], [], []>} : vector<16x1024xbf16>, vector<1024x1xbf16>, vector<16x1xf32> -> vector<16x1xf32>
    %7 = arith.addf %3, %6 : vector<16x1xf32>
    %c0_6 = arith.constant 0 : index
    %c0_7 = arith.constant 0 : index
    %8 = vector.load %arg7[%c0_6, %c0_7] : memref<16x1xf32, #tpu.memory_space<vmem>>, vector<16x1xf32>
    tpu.vector_store %arg7[%c0_6, %c0_7], %7 {strides = array<i32>} : memref<16x1xf32, #tpu.memory_space<vmem>>, vector<16x1xf32>,
    %c0_i32_8 = arith.constant 0 : i32
    %9 = arith.cmpi eq, %arg1, %c0_i32_8 : i32
    %10 = arith.extui %9 : i1 to i32
    %c0_i32_9 = arith.constant 0 : i32
    %11 = arith.cmpi ne, %10, %c0_i32_9 : i32
    scf.if %11 {
      %c0_10 = arith.constant 0 : index
      %12 = memref.load %arg2[%c0_10] : memref<1xf32, #tpu.memory_space<smem>>
      %cst_11 = arith.constant 2.000000e+00 : f32
      %13 = arith.mulf %cst_11, %12 : f32
      %cst_12 = arith.constant 1.000000e+00 : f32
      %14 = arith.subf %13, %cst_12 : f32
      %c0_13 = arith.constant 0 : index
      %c0_14 = arith.constant 0 : index
      %15 = vector.load %arg7[%c0_13, %c0_14] : memref<16x1xf32, #tpu.memory_space<vmem>>, vector<16x1xf32>
      %c0_15 = arith.constant 0 : index
      %c0_16 = arith.constant 0 : index
      %16 = memref.load %arg3[%c0_15, %c0_16] : memref<1x1xf32, #tpu.memory_space<smem>>
      %17 = vector.broadcast %16 : f32 to vector<16x1xf32>
      %18 = arith.addf %15, %17 : vector<16x1xf32>
      %19 = vector.broadcast %14 : f32 to vector<16x1xf32>
      %20 = arith.mulf %19, %18 : vector<16x1xf32>
      %c0_17 = arith.constant 0 : index
      %c0_18 = arith.constant 0 : index
      %21 = vector.load %arg6[%c0_17, %c0_18] : memref<16x1xf32, #tpu.memory_space<vmem>>, vector<16x1xf32>
      tpu.vector_store %arg6[%c0_17, %c0_18], %20 {strides = array<i32>} : memref<16x1xf32, #tpu.memory_space<vmem>>, vector<16x1xf32>,
    } else {
    }
    return
  }
  func.func @transform_0(%arg0: i32, %arg1: i32) -> i32 {
    %c0_i32 = arith.constant 0 : i32
    %c0_i32_0 = arith.constant 0 : i32
    return %c0_i32 : i32
  }
  func.func @transform_1(%arg0: i32, %arg1: i32) -> (i32, i32) {
    %c0_i32 = arith.constant 0 : i32
    %c0_i32_0 = arith.constant 0 : i32
    %c0_i32_1 = arith.constant 0 : i32
    return %c0_i32, %c0_i32_0 : i32, i32
  }
  func.func @transform_2(%arg0: i32, %arg1: i32) -> (i32, i32) {
    %c0_i32 = arith.constant 0 : i32
    return %arg0, %arg1 : i32, i32
  }
  func.func @transform_3(%arg0: i32, %arg1: i32) -> (i32, i32) {
    %c0_i32 = arith.constant 0 : i32
    %c0_i32_0 = arith.constant 0 : i32
    return %arg1, %c0_i32 : i32, i32
  }
  func.func @transform_4(%arg0: i32, %arg1: i32) -> (i32, i32) {
    %c0_i32 = arith.constant 0 : i32
    %c0_i32_0 = arith.constant 0 : i32
    return %arg0, %c0_i32 : i32, i32
  }
}

</mosaic_0001>

<bundles_post_ra>
// kernel: tpu_custom_call.1
= control target key start
LH: loop header
LB: loop body
LE: loop exit
PB: predicated region body
PF: predicated region fallthrough
CT: control target
= control target key end

     0   :  { %11 = vsyncpa [#allocation6], 0  ;;  %s1212_s0 = inlined_call_operand.<no memory space> [shape: f32[1], index: 0, kind: input, shape index: {}]   ;;  %s1213_s1 = inlined_call_operand.<no memory space> [shape: f32[1,1], index: 1, kind: input, shape index: {}]   ;;  %s1214_s2 = inlined_call_operand.hbm [shape: bf16[16,1024], index: 2, kind: input, shape index: {}]   ;;  %s1215_s3 = inlined_call_operand.hbm [shape: bf16[1024,1], index: 3, kind: input, shape index: {}]   ;;  %s1216_s4 = inlined_call_operand.hbm [shape: f32[16,1], index: 4, kind: output, shape index: {}]  }
   0x1   :  { %12 = vsyncpa [#allocation9], 0 }
   0x2   :  { %13 = vsyncpa [#allocation7], 0  ;;  %s1129_s15 = smov [#allocation5]   ;;  %s1057_s19 = scalar_lea.hbm %s1214_s2, 1024 }
   0x3   :  { %s23_s16 = sshll.u32 %s1129_s15, 4  ;;  %p1058_p0 = scmp.ne.s32.totalorder %s1214_s2, %s1057_s19  ;;  %s24_s16 = int_to_ptr.vmem [resolvable:$true] %s23_s16 }
   0x4   :  { %p1061_p1 = scmp.lt.u32.totalorder %s1057_s19, %s1214_s2 }
   0x6   :  { %p1063_p2 = pnand %p1061_p1, %p1058_p0 }
   0x8   :  { %1066 = shalt.err (!%p1063_p2)
}
   0x9   :  { %s1067_s24 = scalar_lea.vmem %s24_s16, 1024  ;;  %p1072_p4 = scmp.lt.s32.totalorder %s24_s16, %s24_s16 }
   0xa   :  { %p1068_p3 = scmp.ne.s32.totalorder %s24_s16, %s1067_s24  ;;  %p1073_p5 = scmp.lt.s32.totalorder %s1067_s24, %s1067_s24 }
   0xc   :  { %p1074_p6 = por %p1073_p5, %p1072_p4 }
   0xe   :  { %p1075_p7 = pnand %p1074_p6, %p1068_p3 }
  0x10   :  { %1078 = shalt.err (!%p1075_p7)
}
  0x11   :  { %s1130_s25 = smov 512   ;;  %s1131_s26 = smov 32  }
  0x12   :  { %29 = dma.hbm_to_vmem [thread:$0]  %s1214_s2, 1024, %s24_s16, [#allocation6], %s1130_s25, %s1130_s25, %s1131_s26  }
  0x13   :  { %s1132_s29 = smov [#allocation8]   ;;  %s1079_s7 = scalar_lea.hbm %s1215_s3, 8192 }
  0x14   :  { %s35_s30 = sshll.u32 %s1132_s29, 4  ;;  %p1080_p8 = scmp.ne.s32.totalorder %s1215_s3, %s1079_s7  ;;  %s36_s30 = int_to_ptr.vmem [resolvable:$true] %s35_s30 }
  0x15   :  { %p1083_p9 = scmp.lt.u32.totalorder %s1079_s7, %s1215_s3 }
  0x17   :  { %p1085_p10 = pnand %p1083_p9, %p1080_p8 }
  0x19   :  { %1088 = shalt.err (!%p1085_p10)
}
  0x1a   :  { %s1089_s12 = scalar_lea.vmem %s36_s30, 8192  ;;  %p1094_p12 = scmp.lt.s32.totalorder %s36_s30, %s36_s30 }
  0x1b   :  { %p1090_p11 = scmp.ne.s32.totalorder %s36_s30, %s1089_s12  ;;  %p1095_p13 = scmp.lt.s32.totalorder %s1089_s12, %s1089_s12 }
  0x1d   :  { %p1096_p0 = por %p1095_p13, %p1094_p12 }
  0x1f   :  { %p1097_p1 = pnand %p1096_p0, %p1090_p11 }
  0x21   :  { %1100 = shalt.err (!%p1097_p1)
}
  0x22   :  { %s1133_s2 = smov 64   ;;  %s1134_s13 = smov 4  }
  0x23   :  { %41 = dma.hbm_to_vmem [thread:$0]  %s1215_s3, 8192, %s36_s30, [#allocation9], %s1133_s2, %s1133_s2, %s1134_s13  }
  0x24   :  { %1123 = dma.done.wait [#allocation6], 1024  }
  0x25   :  { %1124 = vsyncadd [#allocation6], 4294966272 }
  0x26   :  { %1125 = dma.done.wait [#allocation9], 8192  }
  0x27   :  { %1126 = vsyncadd [#allocation9], 4294959104  ;;  %v993_v0 = vld [vmem:[#allocation8 + $0x40] sm:$0xff]   ;;  %v997_v4 = vld [vmem:[#allocation8 + $0x48] sm:$0xff]   ;;  %vm53_vm0 = vcmask 7168   ;;  %s791_s17 = smul.f32 2.0, %s1212_s0 }
  0x28   :  { %v994_v1 = vld [vmem:[#allocation8 + $0xc0] sm:$0xff]   ;;  %895 = vmatprep.subr.bf16.mxu0 %v993_v0  ;;  %v998_v5 = vld [vmem:[#allocation8 + $0xc8] sm:$0xff]   ;;  %v1001_v8 = vld [vmem:[#allocation8 + $0x50] sm:$0xff]   ;;  %s1136_s21 = smov [#allocation10]  }
  0x29   :  { %v995_v2 = vld [vmem:[#allocation8] sm:$0xff]   ;;  %917 = vmatprep.subr.bf16.mxu1 %v994_v1  ;;  %v999_v6 = vld [vmem:[#allocation8 + $0x8] sm:$0xff]   ;;  %v1002_v9 = vld [vmem:[#allocation8 + $0xd0] sm:$0xff]   ;;  %s894_s18 = sadd.f32 -1.0, %s791_s17  ;;  %s809_s22 = sshll.u32 %s1136_s21, 4  ;;  %s810_s22 = int_to_ptr.vmem [resolvable:$true] %s809_s22 }
  0x2a   :  { %v996_v3 = vld [vmem:[#allocation8 + $0x80] sm:$0xff]   ;;  %896 = vmatpush3.bf16.msra.mxu0 %v995_v2  ;;  %v1000_v7 = vld [vmem:[#allocation8 + $0x88] sm:$0xff]   ;;  %v1003_v10 = vld [vmem:[#allocation8 + $0x10] sm:$0xff]   ;;  %s1101_s0 = scalar_lea.vmem %s810_s22, 256  ;;  %p1106_p3 = scmp.lt.s32.totalorder %s810_s22, %s810_s22 }
  0x2b   :  { %918 = vmatpush3.bf16.msra.mxu1 %v996_v3  ;;  %897 = vmatprep.subr.bf16.mxu0 %v997_v4  ;;  %v1004_v11 = vld [vmem:[#allocation8 + $0x90] sm:$0xff]   ;;  %v1005_v12 = vld [vmem:[#allocation8 + $0x58] sm:$0xff]   ;;  %v1009_v16 = vld [vmem:[#allocation8 + $0x60] sm:$0xff]   ;;  %p1102_p2 = scmp.ne.s32.totalorder %s810_s22, %s1101_s0  ;;  %p1107_p4 = scmp.lt.s32.totalorder %s1101_s0, %s1101_s0 }
  0x2c   :  { %919 = vmatprep.subr.bf16.mxu1 %v998_v5  ;;  %v1006_v13 = vld [vmem:[#allocation8 + $0xd8] sm:$0xff]   ;;  %v1010_v17 = vld [vmem:[#allocation8 + $0xe0] sm:$0xff]   ;;  %v1013_v20 = vld [vmem:[#allocation8 + $0x68] sm:$0xff]  }
  0x2d   :  { %v1007_v14 = vld [vmem:[#allocation8 + $0x18] sm:$0xff]   ;;  %v1011_v18 = vld [vmem:[#allocation8 + $0x20] sm:$0xff]   ;;  %v1014_v21 = vld [vmem:[#allocation8 + $0xe8] sm:$0xff]   ;;  %p1108_p5 = por %p1107_p4, %p1106_p3 }
  0x2e   :  { %898 = vmatpush3.bf16.msra.mxu0 %v999_v6  ;;  %v1008_v15 = vld [vmem:[#allocation8 + $0x98] sm:$0xff]   ;;  %v1012_v19 = vld [vmem:[#allocation8 + $0xa0] sm:$0xff]   ;;  %v1015_v22 = vld [vmem:[#allocation8 + $0x28] sm:$0xff]  }
  0x2f   :  { %920 = vmatpush3.bf16.msra.mxu1 %v1000_v7  ;;  %899 = vmatprep.subr.bf16.mxu0 %v1001_v8  ;;  %v1016_v23 = vld [vmem:[#allocation8 + $0xa8] sm:$0xff]   ;;  %v1017_v24 = vld [vmem:[#allocation8 + $0x70] sm:$0xff]   ;;  %v1021_v28 = vld [vmem:[#allocation8 + $0x78] sm:$0xff]   ;;  %p1109_p6 = pnand %p1108_p5, %p1102_p2 }
  0x30   :  { %921 = vmatprep.subr.bf16.mxu1 %v1002_v9  ;;  %v1018_v25 = vld [vmem:[#allocation8 + $0xf0] sm:$0xff]   ;;  %v1022_v29 = vld [vmem:[#allocation8 + $0xf8] sm:$0xff]   ;;  %v58_v32 = vld [vmem:[#allocation5] sm:$0xff] }
  0x31   :  { %v1019_v26 = vld [vmem:[#allocation8 + $0x30] sm:$0xff]   ;;  %v1023_v30 = vld [vmem:[#allocation8 + $0x38] sm:$0xff]   ;;  %v62_v33 = vld [vmem:[#allocation5 + $0x20] sm:$0xff] }
  0x32   :  { %900 = vmatpush3.bf16.msra.mxu0 %v1003_v10  ;;  %v1020_v27 = vld [vmem:[#allocation8 + $0xb0] sm:$0xff]   ;;  %v1024_v31 = vld [vmem:[#allocation8 + $0xb8] sm:$0xff]   ;;  %v59_v34 = vld [vmem:[#allocation5 + $0x8] sm:$0xff]  ;;  %v822_v35 = vcombine.low %v58_v32, %v62_v33  ;;  %v823_v36 = vcombine.high %v58_v32, %v62_v33 }
  0x33   :  { %922 = vmatpush3.bf16.msra.mxu1 %v1004_v11  ;;  %901 = vmatprep.subr.bf16.mxu0 %v1005_v12  ;;  %v63_v37 = vld [vmem:[#allocation5 + $0x28] sm:$0xff]  ;;  %v1025_v40 = vld [vmem:[#allocation8 + $0x140] sm:$0xff]   ;;  %v1033_v48 = vld [vmem:[#allocation8 + $0x150] sm:$0xff]  }
  0x34   :  { %923 = vmatprep.subr.bf16.mxu1 %v1006_v13  ;;  %v824_v38 = vcombine.low %v59_v34, %v63_v37  ;;  %v825_v39 = vcombine.high %v59_v34, %v63_v37  ;;  %650 = vmatprep.mubr.bf16.mxu0 %v823_v36  ;;  %v1026_v41 = vld [vmem:[#allocation8 + $0x1c0] sm:$0xff]   ;;  %v1029_v44 = vld [vmem:[#allocation8 + $0x148] sm:$0xff]   ;;  %v1034_v49 = vld [vmem:[#allocation8 + $0x1d0] sm:$0xff]  }
  0x35   :  { %v1027_v42 = vld [vmem:[#allocation8 + $0x100] sm:$0xff]   ;;  %v1030_v45 = vld [vmem:[#allocation8 + $0x1c8] sm:$0xff]   ;;  %v1035_v50 = vld [vmem:[#allocation8 + $0x110] sm:$0xff]  }
  0x36   :  { %902 = vmatpush3.bf16.msra.mxu0 %v1007_v14  ;;  %691 = vmatprep.mubr.bf16.mxu1 %v825_v39  ;;  %v1028_v43 = vld [vmem:[#allocation8 + $0x180] sm:$0xff]   ;;  %v1031_v46 = vld [vmem:[#allocation8 + $0x108] sm:$0xff]   ;;  %v1036_v51 = vld [vmem:[#allocation8 + $0x190] sm:$0xff]  }
  0x37   :  { %924 = vmatpush3.bf16.msra.mxu1 %v1008_v15  ;;  %903 = vmatprep.subr.bf16.mxu0 %v1009_v16  ;;  %v1032_v47 = vld [vmem:[#allocation8 + $0x188] sm:$0xff]   ;;  %v1037_v52 = vld [vmem:[#allocation8 + $0x158] sm:$0xff]   ;;  %v1041_v56 = vld [vmem:[#allocation8 + $0x160] sm:$0xff]   ;;  %v1135_v16 = vmov 0.0  }
  0x38   :  { %925 = vmatprep.subr.bf16.mxu1 %v1010_v17  ;;  %v1038_v53 = vld [vmem:[#allocation8 + $0x1d8] sm:$0xff]   ;;  %v1042_v57 = vld [vmem:[#allocation8 + $0x1e0] sm:$0xff]   ;;  %v1045_v60 = vld [vmem:[#allocation8 + $0x168] sm:$0xff]   ;;  %54 = vst.msk [vmem:[#allocation2] sm:$0xff] %vm53_vm0, %v1135_v16 }
  0x39   :  { %v1039_v54 = vld [vmem:[#allocation8 + $0x118] sm:$0xff]   ;;  %v1043_v58 = vld [vmem:[#allocation8 + $0x120] sm:$0xff]   ;;  %v1046_v61 = vld [vmem:[#allocation8 + $0x1e8] sm:$0xff]   ;;  %55 = vst.msk [vmem:[#allocation2 + $0x8] sm:$0xff] %vm53_vm0, %v1135_v16 }
  0x3a   :  { %904 = vmatpush3.bf16.msra.mxu0 %v1011_v18  ;;  %v1040_v55 = vld [vmem:[#allocation8 + $0x198] sm:$0xff]   ;;  %v1044_v59 = vld [vmem:[#allocation8 + $0x1a0] sm:$0xff]   ;;  %v1047_v62 = vld [vmem:[#allocation8 + $0x128] sm:$0xff]  }
  0x3b   :  { %926 = vmatpush3.bf16.msra.mxu1 %v1012_v19  ;;  %905 = vmatprep.subr.bf16.mxu0 %v1013_v20  ;;  %v1048_v63 = vld [vmem:[#allocation8 + $0x1a8] sm:$0xff]   ;;  %v1049_v0 = vld [vmem:[#allocation8 + $0x170] sm:$0xff]   ;;  %v1053_v4 = vld [vmem:[#allocation8 + $0x178] sm:$0xff]  }
  0x3c   :  { %927 = vmatprep.subr.bf16.mxu1 %v1014_v21  ;;  %v1050_v1 = vld [vmem:[#allocation8 + $0x1f0] sm:$0xff]   ;;  %v1054_v5 = vld [vmem:[#allocation8 + $0x1f8] sm:$0xff]  }
  0x3d   :  { %v1051_v2 = vld [vmem:[#allocation8 + $0x130] sm:$0xff]   ;;  %v1055_v6 = vld [vmem:[#allocation8 + $0x138] sm:$0xff]  }
  0x3e   :  { %906 = vmatpush3.bf16.msra.mxu0 %v1015_v22  ;;  %v1052_v3 = vld [vmem:[#allocation8 + $0x1b0] sm:$0xff]   ;;  %v1056_v7 = vld [vmem:[#allocation8 + $0x1b8] sm:$0xff]  }
  0x3f   :  { %928 = vmatpush3.bf16.msra.mxu1 %v1016_v23  ;;  %907 = vmatprep.subr.bf16.mxu0 %v1017_v24  ;;  %v60_v8 = vld [vmem:[#allocation5 + $0x10] sm:$0xff]  ;;  %v61_v12 = vld [vmem:[#allocation5 + $0x18] sm:$0xff] }
  0x40   :  { %929 = vmatprep.subr.bf16.mxu1 %v1018_v25  ;;  %v64_v9 = vld [vmem:[#allocation5 + $0x30] sm:$0xff]  ;;  %v65_v13 = vld [vmem:[#allocation5 + $0x38] sm:$0xff] }
  0x41   :  { %v826_v10 = vcombine.low %v60_v8, %v64_v9  ;;  %v827_v11 = vcombine.high %v60_v8, %v64_v9  ;;  %v828_v14 = vcombine.low %v61_v12, %v65_v13  ;;  %v829_v15 = vcombine.high %v61_v12, %v65_v13 }
  0x42   :  { %908 = vmatpush3.bf16.msra.mxu0 %v1019_v26 }
  0x43   :  { %930 = vmatpush3.bf16.msra.mxu1 %v1020_v27  ;;  %909 = vmatprep.subr.bf16.mxu0 %v1021_v28 }
  0x44   :  { %931 = vmatprep.subr.bf16.mxu1 %v1022_v29 }
  0x46   :  { %910 = vmatpush3.bf16.msra.mxu0 %v1023_v30 }
  0x47   :  { %932 = vmatpush3.bf16.msra.mxu1 %v1024_v31  ;;  %939 = vmatprep.subr.bf16.mxu0 %v1025_v40 }
  0x48   :  { %961 = vmatprep.subr.bf16.mxu1 %v1026_v41 }
  0x49   :  { %651 = vmatmul.mubr.bf16.vlgmr.msra.gmra.mrb[0].mxu0 %v822_v35 }
  0x4a   :  { %692 = vmatmul.mubr.bf16.vlgmr.msra.gmra.mrb[0].mxu1 %v824_v38  ;;  %940 = vmatpush3.bf16.msra.mxu0 %v1027_v42 }
  0x4b   :  { %962 = vmatpush3.bf16.msra.mxu1 %v1028_v43  ;;  %941 = vmatprep.subr.bf16.mxu0 %v1029_v44  ;;  %v56_v43 = vld [vmem:[#allocation2] sm:$0xff] }
  0x4c   :  { %963 = vmatprep.subr.bf16.mxu1 %v1030_v45  ;;  %732 = vmatprep.mubr.bf16.mxu0 %v827_v11 }
  0x4d   :  { %773 = vmatprep.mubr.bf16.mxu1 %v829_v15 }
  0x4e   :  { %942 = vmatpush3.bf16.msra.mxu0 %v1031_v46 }
  0x4f   :  { %964 = vmatpush3.bf16.msra.mxu1 %v1032_v47  ;;  %943 = vmatprep.subr.bf16.mxu0 %v1033_v48  ;;  %v57_v47 = vld [vmem:[#allocation2 + $0x8] sm:$0xff] }
  0x50   :  { %965 = vmatprep.subr.bf16.mxu1 %v1034_v49 }
  0x52   :  { %944 = vmatpush3.bf16.msra.mxu0 %v1035_v50 }
  0x53   :  { %966 = vmatpush3.bf16.msra.mxu1 %v1036_v51  ;;  %945 = vmatprep.subr.bf16.mxu0 %v1037_v52  ;;  %v796_v51 = vstv %s1213_s1 }
  0x54   :  { %967 = vmatprep.subr.bf16.mxu1 %v1038_v53  ;;  %v799_v53 = vstv %s894_s18 }
  0x56   :  { %946 = vmatpush3.bf16.msra.mxu0 %v1039_v54 }
  0x57   :  { %968 = vmatpush3.bf16.msra.mxu1 %v1040_v55  ;;  %947 = vmatprep.subr.bf16.mxu0 %v1041_v56 }
  0x58   :  { %969 = vmatprep.subr.bf16.mxu1 %v1042_v57 }
  0x5a   :  { %948 = vmatpush3.bf16.msra.mxu0 %v1043_v58 }
  0x5b   :  { %970 = vmatpush3.bf16.msra.mxu1 %v1044_v59  ;;  %949 = vmatprep.subr.bf16.mxu0 %v1045_v60 }
  0x5c   :  { %971 = vmatprep.subr.bf16.mxu1 %v1046_v61 }
  0x5e   :  { %950 = vmatpush3.bf16.msra.mxu0 %v1047_v62 }
  0x5f   :  { %972 = vmatpush3.bf16.msra.mxu1 %v1048_v63  ;;  %951 = vmatprep.subr.bf16.mxu0 %v1049_v0 }
  0x60   :  { %973 = vmatprep.subr.bf16.mxu1 %v1050_v1 }
  0x62   :  { %952 = vmatpush3.bf16.msra.mxu0 %v1051_v2 }
  0x63   :  { %974 = vmatpush3.bf16.msra.mxu1 %v1052_v3  ;;  %953 = vmatprep.subr.bf16.mxu0 %v1053_v4 }
  0x64   :  { %975 = vmatprep.subr.bf16.mxu1 %v1054_v5 }
  0x66   :  { %954 = vmatpush3.bf16.msra.mxu0 %v1055_v6 }
  0x67   :  { %976 = vmatpush3.bf16.msra.mxu1 %v1056_v7 }
  0x69   :  { %733 = vmatmul.mubr.bf16.vlgmr.msra.gmra.mrb[4].mxu0 %v826_v10 }
  0x6a   :  { %774 = vmatmul.mubr.bf16.vlgmr.msra.gmra.mrb[4].mxu1 %v828_v14 }
 0x11c   :  { %v911_v17 = vpop.f32.mrb[0].mxu0 }
 0x11d   :  { %v933_v18 = vpop.f32.mrb[0].mxu1  ;;  %v912_v19 = vpop.f32.mrb[1].mxu0 }
 0x11e   :  { %v913_v20 = vadd.f32 %v912_v19, %v911_v17  ;;  %v934_v21 = vpop.f32.mrb[1].mxu1  ;;  %v914_v22 = vpop.f32.mrb[2].mxu0 }
 0x11f   :  { %v935_v23 = vadd.f32 %v934_v21, %v933_v18  ;;  %v936_v24 = vpop.f32.mrb[2].mxu1  ;;  %v915_v25 = vpop.f32.mrb[3].mxu0 }
 0x120   :  { %v916_v26 = vadd.f32 %v915_v25, %v914_v22  ;;  %v937_v27 = vpop.f32.mrb[3].mxu1 }
 0x121   :  { %v694_v28 = vadd.f32 %v935_v23, %v913_v20  ;;  %v938_v29 = vadd.f32 %v937_v27, %v936_v24 }
 0x123   :  { %v697_v30 = vadd.f32 %v938_v29, %v916_v26 }
 0x13c   :  { %v955_v31 = vpop.f32.mrb[4].mxu0 }
 0x13d   :  { %v977_v32 = vpop.f32.mrb[4].mxu1  ;;  %v956_v33 = vpop.f32.mrb[5].mxu0 }
 0x13e   :  { %v957_v34 = vadd.f32 %v956_v33, %v955_v31  ;;  %v978_v35 = vpop.f32.mrb[5].mxu1  ;;  %v958_v36 = vpop.f32.mrb[6].mxu0 }
 0x13f   :  { %v979_v37 = vadd.f32 %v978_v35, %v977_v32  ;;  %v980_v38 = vpop.f32.mrb[6].mxu1  ;;  %v959_v39 = vpop.f32.mrb[7].mxu0 }
 0x140   :  { %v735_v40 = vadd.f32 %v957_v34, %v694_v28  ;;  %v960_v41 = vadd.f32 %v959_v39, %v958_v36  ;;  %v981_v42 = vpop.f32.mrb[7].mxu1 }
 0x141   :  { %v982_v44 = vadd.f32 %v981_v42, %v980_v38 }
 0x142   :  { %v776_v45 = vadd.f32 %v979_v37, %v735_v40  ;;  %v738_v46 = vadd.f32 %v960_v41, %v697_v30 }
 0x144   :  { %v782_v48 = vadd.f32 %v776_v45, %v56_v43  ;;  %v779_v49 = vadd.f32 %v982_v44, %v738_v46 }
 0x146   :  { %785 = vst.msk [vmem:[#allocation2] sm:$0xff] %vm53_vm0, %v782_v48  ;;  %v783_v50 = vadd.f32 %v779_v49, %v57_v47 }
 0x148   :  { %786 = vst.msk [vmem:[#allocation2 + $0x8] sm:$0xff] %vm53_vm0, %v783_v50 }
 0x14d   :  { %v793_v52 = vld [vmem:[#allocation2] sm:$0xff] }
 0x14e   :  { %v797_v54 = vadd.f32 %v796_v51, %v793_v52 }
 0x14f   :  { %v794_v55 = vld [vmem:[#allocation2 + $0x8] sm:$0xff] }
 0x150   :  { %v798_v56 = vadd.f32 %v796_v51, %v794_v55  ;;  %v800_v57 = vmul.f32 %v799_v53, %v797_v54 }
 0x152   :  { %v801_v58 = vmul.f32 %v799_v53, %v798_v56  ;;  %802 = vst.msk [vmem:[#allocation10] sm:$0xff] %vm53_vm0, %v800_v57 }
 0x154   :  { %803 = vst.msk [vmem:[#allocation10 + $0x8] sm:$0xff] %vm53_vm0, %v801_v58 }
 0x155   :  { %1112 = shalt.err (!%p1109_p6)
}
 0x156   :  { %s1113_s24 = scalar_lea.hbm %s1216_s4, 256 }
 0x157   :  { %p1114_p7 = scmp.ne.s32.totalorder %s1216_s4, %s1113_s24  ;;  %p1117_p8 = scmp.lt.u32.totalorder %s1113_s24, %s1216_s4 }
 0x159   :  { %p1119_p9 = pnand %p1117_p8, %p1114_p7 }
 0x15b   :  { %1122 = shalt.err (!%p1119_p9)
}
 0x15c   :  { %s1137_s29 = smov 128   ;;  %s1138_s30 = smov 8  }
 0x15d   :  { %815 = dma.vmem_to_hbm [thread:$0]  %s810_s22, 256, %s1216_s4, [#allocation7], %s1137_s29, %s1137_s29, %s1138_s30  }
 0x15e   :  { %1127 = dma.done.wait [#allocation7], 256  }
 0x15f   :  { %1128 = vsyncadd [#allocation7], 4294967040 }
 0x160   :  { %819 = vsyncpa [#allocation6], 1 }
 0x161   :  { %820 = vsyncpa [#allocation9], 1 }
 0x162   :  { %821 = vsyncpa [#allocation7], 1 }

</bundles_post_ra>
